<compile_context>
chip_gen: v5e
topology: v5e:2x2
jax: 0.10.0
libtpu: 0.0.40
codegen_flags: <defaults>
</compile_context>

<pallas_src>
import jax
import jax.numpy as jnp
from jax.experimental import pallas as pl
from jax.experimental.pallas import tpu as pltpu


_VMEM_LIMIT_BYTES = 60 * 1024 * 1024   # > default scoped (16/32 MiB), < v7x 64 MiB


def _cparams(dims=None):
    return pltpu.CompilerParams(dimension_semantics=dims,
                                vmem_limit_bytes=_VMEM_LIMIT_BYTES)


def _pick_tile(dim, candidates):
    """Largest candidate that evenly divides `dim`, else the full dim."""
    for c in candidates:
        if dim % c == 0:
            return c
    return dim


def _pick_block_batch(bc):
    """ctx-batch block: multiple of 8 (sublane aligned) or the full batch."""
    for c in (16, 8):
        if bc % c == 0:
            return c
    return bc


# ---------------------- 1. hoisted LSTM input projection ----------------------
def _input_proj_kernel(x_ref, w_ref, b_ref, o_ref):
    # (tm, E) bf16 @ (E, 4H) bf16 -> f32 accumulate, + f32 bias, store bf16.
    o_ref[...] = (jnp.dot(x_ref[...], w_ref[...],
                          preferred_element_type=jnp.float32)
                  + b_ref[...]).astype(o_ref.dtype)


def run_input_proj(x_flat, w_ih_t, bias):
    """x_flat: (S*B, E) bf16 time-major flattened embeds. Returns (S*B, 4H) bf16."""
    SB, E = x_flat.shape
    G = w_ih_t.shape[-1]                              # 4H
    tm = _pick_tile(SB, (256, 128, 64, 32, 16, 8))    # ~256 on v6e/v7x, 128 on v5e
    # TODO(synk): fuse the embedding gather here via PrefetchScalarGridSpec
    # (num_scalar_prefetch=1, words prefetched) to avoid materializing embeds in HBM.
    return pl.pallas_call(
        _input_proj_kernel,
        out_shape=jax.ShapeDtypeStruct((SB, G), jnp.bfloat16),
        grid_spec=pltpu.PrefetchScalarGridSpec(
            num_scalar_prefetch=0,
            grid=(SB // tm,),
            in_specs=[
                pl.BlockSpec((tm, E), lambda i: (i, 0)),   # activation rows (streamed)
                pl.BlockSpec((E, G), lambda i: (0, 0)),    # W_ih^T (resident)
                pl.BlockSpec((1, G), lambda i: (0, 0)),    # bias   (resident)
            ],
            out_specs=pl.BlockSpec((tm, G), lambda i: (i, 0)),
        ),
        compiler_params=_cparams(("parallel",)),
    )(x_flat, w_ih_t, bias)


# --------------------------- 2. LSTM recurrence -------------------------------
def _lstm_recurrence_kernel(gx_ref, whh_ref, h0_ref, c0_ref, y_ref, h_ref, c_ref):
    S = gx_ref.shape[0]
    H = h0_ref.shape[-1]
    whh = whh_ref[...]                                # (H, 4H) bf16, VMEM-resident

    def step(t, carry):
        h_prev, c_prev = carry                        # f32 state
        # Only the recurrent matmul remains on the serial critical path.
        gates = (gx_ref[t].astype(jnp.float32)
                 + jnp.dot(h_prev.astype(jnp.bfloat16), whh,
                           preferred_element_type=jnp.float32))      # (B, 4H)
        # PyTorch gate order: i, f, g, o.
        # TODO(synk): for production sizes make H a multiple of 128 so these gate
        # slices are lane-aligned (no cross-lane copies on the serial path).
        i_g = jax.nn.sigmoid(gates[:, 0 * H:1 * H])
        f_g = jax.nn.sigmoid(gates[:, 1 * H:2 * H])
        g_g = jnp.tanh(gates[:, 2 * H:3 * H])
        o_g = jax.nn.sigmoid(gates[:, 3 * H:4 * H])
        c_new = f_g * c_prev + i_g * g_g
        h_new = o_g * jnp.tanh(c_new)
        y_ref[t] = h_new.astype(y_ref.dtype)
        return h_new, c_new

    # unroll=2: lets the scheduler overlap EUP/VPU of step t with MXU/load of t+1.
    h_fin, c_fin = jax.lax.fori_loop(0, S, step, (h0_ref[...], c0_ref[...]),
                                     unroll=2)
    h_ref[...] = h_fin
    c_ref[...] = c_fin


def run_lstm_recurrence(gx_tm, w_hh_t, h0, c0):
    """gx_tm: (S, B, 4H) bf16 precomputed input gates. Returns (y (S,B,H) bf16, h1, c1 f32)."""
    S, B, G = gx_tm.shape
    H = h0.shape[-1]
    full = lambda shape: pl.BlockSpec(shape, lambda: tuple(0 for _ in shape))
    # TODO(synk): at real S*B stream gx[t] / y[t] from HBM (memory_space=pl.ANY +
    # double-buffered make_async_copy) instead of keeping them fully VMEM-resident,
    # and shard the batch across v7x's 2 TensorCores with a leading core-parallel axis.
    return pl.pallas_call(
        _lstm_recurrence_kernel,
        out_shape=(
            jax.ShapeDtypeStruct((S, B, H), jnp.bfloat16),
            jax.ShapeDtypeStruct((B, H), jnp.float32),
            jax.ShapeDtypeStruct((B, H), jnp.float32),
        ),
        grid_spec=pltpu.PrefetchScalarGridSpec(
            num_scalar_prefetch=0, grid=(),
            in_specs=[full((S, B, G)), full((H, G)), full((B, H)), full((B, H))],
            out_specs=[full((S, B, H)), full((B, H)), full((B, H))],
        ),
        compiler_params=_cparams(),
    )(gx_tm, w_hh_t, h0, c0)


# --------------------------- 3. SoftDotAttention ------------------------------
def _attn_kernel(q_ref, ctx_ref, maskb_ref, win_ref, wout_wc_ref, wout_h_ref, o_ref):
    M, Bt, H = q_ref.shape
    F = ctx_ref.shape[-1]

    # Time-major query tile -> batch-major: a small in-VMEM relayout that replaces
    # a full HBM transpose pass of the (S, B, H) LSTM output in the wrapper.
    q = jnp.transpose(q_ref[...], (1, 0, 2))                           # (Bt, M, H) bf16
    ctx = ctx_ref[...]                                                 # (Bt, L, F) bf16

    q2 = q.reshape(Bt * M, H)                                          # big-M rows
    # target = linear_in(h): one large MXU matmul over the whole block.
    target = jnp.dot(q2, win_ref[...],
                     preferred_element_type=jnp.float32)               # (Bt*M, F)
    target = target.astype(jnp.bfloat16).reshape(Bt, M, F)

    # attn = target @ ctx^T per ctx element (batched MXU contraction over F).
    attn = jnp.einsum('bmf,blf->bml', target, ctx,
                      preferred_element_type=jnp.float32)              # (Bt, M, L)
    attn = attn + maskb_ref[...]            # 0.0 valid / -1e30 masked (finite -> no NaN)

    # Softmax over L; denominator reciprocal on the otherwise idle EUP slot.
    attn = attn - jnp.max(attn, axis=-1, keepdims=True)
    e = jnp.exp(attn)
    p = e * pl.reciprocal(jnp.sum(e, axis=-1, keepdims=True), approx=True)

    # weighted_context = softmax(attn) @ ctx  (batched MXU).
    wc = jnp.einsum('bml,blf->bmf', p.astype(jnp.bfloat16), ctx,
                    preferred_element_type=jnp.float32)                # (Bt, M, F)
    wc2 = wc.astype(jnp.bfloat16).reshape(Bt * M, F)

    # h_tilde = tanh(linear_out(cat([wc, h], -1)))  (split matmul == concat matmul).
    h_tilde = jnp.tanh(
        jnp.dot(wc2, wout_wc_ref[...], preferred_element_type=jnp.float32)
        + jnp.dot(q2, wout_h_ref[...], preferred_element_type=jnp.float32))
    o_ref[...] = h_tilde.reshape(Bt, M, H).astype(o_ref.dtype)


def run_attention(q_tm, ctx, mask_bias, w_in_t, w_out_wc, w_out_h):
    """q_tm: (M, Bc, H) bf16 time-major queries; ctx: (Bc, L, F) bf16. Returns (Bc, M, H) bf16."""
    M, Bc, H = q_tm.shape
    _, L, F = ctx.shape
    bt = _pick_block_batch(Bc)
    # TODO(synk): on v7x mark the invariant weight specs pipeline_mode=pl.Buffered(1)
    # (constant index_map -> DMA'd once) to halve their VMEM footprint.
    return pl.pallas_call(
        _attn_kernel,
        out_shape=jax.ShapeDtypeStruct((Bc, M, H), jnp.bfloat16),
        grid_spec=pltpu.PrefetchScalarGridSpec(
            num_scalar_prefetch=0,
            grid=(Bc // bt,),
            in_specs=[
                pl.BlockSpec((M, bt, H), lambda b: (0, b, 0)),   # queries, time-major slice
                pl.BlockSpec((bt, L, F), lambda b: (b, 0, 0)),   # ctx block (no S-fold broadcast)
                pl.BlockSpec((bt, 1, L), lambda b: (b, 0, 0)),   # additive mask bias
                pl.BlockSpec((H, F), lambda b: (0, 0)),          # W_in^T
                pl.BlockSpec((F, H), lambda b: (0, 0)),          # W_out^T (wc part)
                pl.BlockSpec((H, H), lambda b: (0, 0)),          # W_out^T (h part)
            ],
            out_specs=pl.BlockSpec((bt, M, H), lambda b: (b, 0, 0)),
        ),
        compiler_params=_cparams(("parallel",)),
    )(q_tm, ctx, mask_bias, w_in_t, w_out_wc, w_out_h)


# ------------------------- 4. vocab projection kernel -------------------------
def _proj_kernel(x_ref, w_ref, b_ref, o_ref):
    o_ref[...] = (jnp.dot(x_ref[...], w_ref[...],
                          preferred_element_type=jnp.float32)
                  + b_ref[...])


def run_projection(x, w_proj_t, b_proj):
    """x: (R, H) bf16 h_tilde rows. Returns logits (R, V) f32."""
    R, H = x.shape
    V = w_proj_t.shape[-1]
    tm = _pick_tile(R, (256, 128, 64, 32, 16, 8))
    tv = _pick_tile(V, (512, 256, 128))
    # TODO(synk): at real vocab sizes pad V to a multiple of 128 so every output
    # block is lane-dense (unmasked vst) instead of masked partial stores.
    return pl.pallas_call(
        _proj_kernel,
        out_shape=jax.ShapeDtypeStruct((R, V), jnp.float32),
        grid_spec=pltpu.PrefetchScalarGridSpec(
            num_scalar_prefetch=0,
            grid=(R // tm, V // tv),
            in_specs=[
                pl.BlockSpec((tm, H), lambda i, j: (i, 0)),     # h_tilde rows
                pl.BlockSpec((H, tv), lambda i, j: (0, j)),     # W_proj^T tile (streamed)
                pl.BlockSpec((1, tv), lambda i, j: (0, j)),     # bias tile
            ],
            out_specs=pl.BlockSpec((tm, tv), lambda i, j: (i, j)),
        ),
        compiler_params=_cparams(("parallel", "parallel")),
    )(x, w_proj_t, b_proj)


# ------------------------------ full module -----------------------------------
def speaker_decoder_v2(params, words, ctx, ctx_mask, h0, c0):
    """words:(B,S) int32, ctx:(Bc,L,F), ctx_mask:(Bc,L) bool, h0/c0:(1,B,H) f32."""
    B, S = words.shape
    H = params["w_hh_t"].shape[0]
    Bc, L, F = ctx.shape
    BL = B * S
    assert BL % Bc == 0, "B*S must be a multiple of ctx batch (PyTorch view semantics)"
    multiplier = BL // Bc

    # Embedding gather directly in time-major order (no HBM transpose of embeds).
    # Dropout layers are identity (eval mode).
    embeds_tm = jnp.take(params["embedding"], words.T, axis=0)       # (S, B, E) bf16
    E = embeds_tm.shape[-1]

    # LSTM: hoisted input projection (tiled MXU matmul) + in-kernel recurrence.
    gx_flat = run_input_proj(embeds_tm.reshape(S * B, E),
                             params["w_ih_t"], params["lstm_b"])     # (S*B, 4H) bf16
    gx_tm = gx_flat.reshape(S, B, 4 * H)
    y_tm, h1, c1 = run_lstm_recurrence(gx_tm, params["w_hh_t"], h0[0], c0[0])

    # SoftDotAttention over the ORIGINAL ctx batch.  PyTorch flattens queries as
    # row r = b*S + s and expands ctx so row r uses ctx[r // multiplier]; when
    # Bc == B that grouping is exactly per-batch, so the time-major LSTM output is
    # consumed directly (no transpose / reshape HBM pass).
    if Bc == B:
        q_tm = y_tm                                                  # (S, B, H), M = S
    else:
        x_rows = jnp.transpose(y_tm, (1, 0, 2)).reshape(BL, H)       # row r = b*S + s
        q_tm = jnp.transpose(x_rows.reshape(Bc, multiplier, H), (1, 0, 2))

    mask_bias = jnp.where(ctx_mask, -1e30, 0.0).astype(jnp.float32).reshape(Bc, 1, L)
    h_tilde = run_attention(q_tm, ctx.astype(jnp.bfloat16), mask_bias,
                            params["w_in_t"], params["w_out_wc"], params["w_out_h"])
    # (Bc, multiplier, H): flattening gives rows back in r = b*S + s order.

    logit_flat = run_projection(h_tilde.reshape(BL, H),
                                params["w_proj_t"], params["b_proj"])  # (BL, V) f32
    logit = logit_flat.reshape(B, S, -1)
    return logit, h1[None], c1[None]


# ------------------------------ parameter init --------------------------------
def init_params(key, vocab_size, embedding_size, padding_idx, hidden_size,
                feature_size):
    V, E, H, F = vocab_size, embedding_size, hidden_size, feature_size
    ks = jax.random.split(key, 9)
    scale = 0.1
    emb = scale * jax.random.normal(ks[0], (V, E), jnp.float32)
    emb = emb.at[padding_idx].set(0.0)                               # padding_idx row = 0
    w_ih = scale * jax.random.normal(ks[1], (4 * H, E), jnp.float32)
    w_hh = scale * jax.random.normal(ks[2], (4 * H, H), jnp.float32)
    b_ih = scale * jax.random.normal(ks[3], (4 * H,), jnp.float32)
    b_hh = scale * jax.random.normal(ks[4], (4 * H,), jnp.float32)
    w_in = scale * jax.random.normal(ks[5], (F, H), jnp.float32)     # linear_in (no bias)
    w_out = scale * jax.random.normal(ks[6], (H, H + F), jnp.float32)  # linear_out (no bias)
    w_proj = scale * jax.random.normal(ks[7], (V, H), jnp.float32)
    b_proj = scale * jax.random.normal(ks[8], (V,), jnp.float32)
    # TODO(synk): baseline_projection and SoftDotAttention.bn are unused in forward(); omitted.
    w_out_t = w_out.T                                                # (F+H, H); input is [wc, h]
    bf16 = jnp.bfloat16
    return {
        "embedding": emb.astype(bf16),             # (V, E)
        "w_ih_t": w_ih.T.astype(bf16),             # (E, 4H)
        "w_hh_t": w_hh.T.astype(bf16),             # (H, 4H)
        "lstm_b": (b_ih + b_hh)[None, :],          # (1, 4H) f32
        "w_in_t": w_in.T.astype(bf16),             # (H, F)
        "w_out_wc": w_out_t[:F, :].astype(bf16),   # (F, H)
        "w_out_h": w_out_t[F:, :].astype(bf16),    # (H, H)
        "w_proj_t": w_proj.T.astype(bf16),         # (H, V)
        "b_proj": b_proj[None, :],                 # (1, V) f32
    }


if __name__ == "__main__":
    # module hyperparams
    vocab_size, embedding_size, padding_idx = 64, 32, 0
    hidden_size, feature_size, dropout_ratio = 32, 32, 0.0

    # small example shapes
    B, S, L = 2, 8, 8

    key = jax.random.PRNGKey(0)
    k_w, k_ctx, k_h, k_c, k_p = jax.random.split(key, 5)

    words = jax.random.randint(k_w, (B, S), 0, vocab_size, dtype=jnp.int32)
    ctx = jax.random.normal(k_ctx, (B, L, feature_size), jnp.float32)
    lens = jnp.array([6, 7], dtype=jnp.int32)
    ctx_mask = jnp.arange(L)[None, :] >= lens[:, None]               # True => masked
    h0 = jax.random.normal(k_h, (1, B, hidden_size), jnp.float32)
    c0 = jax.random.normal(k_c, (1, B, hidden_size), jnp.float32)

    params = init_params(jax.random.PRNGKey(42), vocab_size, embedding_size,
                         padding_idx, hidden_size, feature_size)

    logit, h1, c1 = speaker_decoder_v2(params, words, ctx, ctx_mask, h0, c0)
    jax.block_until_ready((logit, h1, c1))

    assert logit.shape == (B, S, vocab_size)
    assert h1.shape == (1, B, hidden_size) and c1.shape == (1, B, hidden_size)
    assert bool(jnp.all(jnp.isfinite(logit)))
    assert bool(jnp.all(jnp.isfinite(h1))) and bool(jnp.all(jnp.isfinite(c1)))
    print("KERNEL_OK")
</pallas_src>

<mosaic_0001>
module attributes {stable_mosaic.version = 11 : i64} {
  func.func @_input_proj_kernel(%arg0: i32, %arg1: memref<16x32xbf16, #tpu.memory_space<vmem>>, %arg2: memref<32x128xbf16, #tpu.memory_space<vmem>>, %arg3: memref<1x128xf32, #tpu.memory_space<vmem>>, %arg4: memref<16x128xbf16, #tpu.memory_space<vmem>>) attributes {dimension_semantics = [#tpu.dimension_semantics<parallel>], iteration_bounds = array<i64: 1>, scalar_prefetch = 0 : i64, scratch_operands = 0 : i64, tpu.core_type = #tpu.core_type<tc>, window_params = [{transform_indices = @transform_0, window_bounds = array<i64: 16, 32>}, {pipeline_mode = #tpu.pipeline_mode<synchronous>, transform_indices = @transform_1, window_bounds = array<i64: 32, 128>}, {pipeline_mode = #tpu.pipeline_mode<synchronous>, transform_indices = @transform_2, window_bounds = array<i64: 1, 128>}, {transform_indices = @transform_3, window_bounds = array<i64: 16, 128>}]} {
    %c0 = arith.constant 0 : index
    %c0_0 = arith.constant 0 : index
    %0 = vector.load %arg1[%c0, %c0_0] : memref<16x32xbf16, #tpu.memory_space<vmem>>, vector<16x32xbf16>
    %c0_1 = arith.constant 0 : index
    %c0_2 = arith.constant 0 : index
    %1 = vector.load %arg2[%c0_1, %c0_2] : memref<32x128xbf16, #tpu.memory_space<vmem>>, vector<32x128xbf16>
    %cst = arith.constant dense<0.000000e+00> : vector<16x128xf32>
    %2 = tpu.matmul %0, %1, %cst {dimension_numbers = #tpu.dot_dimension_numbers<[1], [0], [0], [1], [0, 0, 1, 1], [], []>} : vector<16x32xbf16>, vector<32x128xbf16>, vector<16x128xf32> -> vector<16x128xf32>
    %c0_3 = arith.constant 0 : index
    %c0_4 = arith.constant 0 : index
    %3 = vector.load %arg3[%c0_3, %c0_4] : memref<1x128xf32, #tpu.memory_space<vmem>>, vector<1x128xf32>
    %4 = vector.broadcast %3 : vector<1x128xf32> to vector<16x128xf32>
    %5 = arith.addf %2, %4 : vector<16x128xf32>
    %6 = arith.truncf %5 : vector<16x128xf32> to vector<16x128xbf16>
    %c0_5 = arith.constant 0 : index
    %c0_6 = arith.constant 0 : index
    %7 = vector.load %arg4[%c0_5, %c0_6] : memref<16x128xbf16, #tpu.memory_space<vmem>>, vector<16x128xbf16>
    tpu.vector_store %arg4[%c0_5, %c0_6], %6 {strides = array<i32>} : memref<16x128xbf16, #tpu.memory_space<vmem>>, vector<16x128xbf16>,
    return
  }
  func.func @transform_0(%arg0: i32) -> (i32, i32) {
    %c0_i32 = arith.constant 0 : i32
    %c0_i32_0 = arith.constant 0 : i32
    return %arg0, %c0_i32 : i32, i32
  }
  func.func @transform_1(%arg0: i32) -> (i32, i32) {
    %c0_i32 = arith.constant 0 : i32
    %c0_i32_0 = arith.constant 0 : i32
    %c0_i32_1 = arith.constant 0 : i32
    return %c0_i32, %c0_i32_0 : i32, i32
  }
  func.func @transform_2(%arg0: i32) -> (i32, i32) {
    %c0_i32 = arith.constant 0 : i32
    %c0_i32_0 = arith.constant 0 : i32
    %c0_i32_1 = arith.constant 0 : i32
    return %c0_i32, %c0_i32_0 : i32, i32
  }
  func.func @transform_3(%arg0: i32) -> (i32, i32) {
    %c0_i32 = arith.constant 0 : i32
    %c0_i32_0 = arith.constant 0 : i32
    return %arg0, %c0_i32 : i32, i32
  }
}

</mosaic_0001>

<bundles_post_ra>
// kernel: tpu_custom_call.1
= control target key start
LH: loop header
LB: loop body
LE: loop exit
PB: predicated region body
PF: predicated region fallthrough
CT: control target
= control target key end

     0   :  { %8 = vsyncpa [#allocation3], 0  ;;  %s268_s0 = inlined_call_operand.hbm [shape: bf16[16,32], index: 0, kind: input, shape index: {}]   ;;  %s269_s1 = inlined_call_operand.hbm [shape: bf16[32,128], index: 1, kind: input, shape index: {}]   ;;  %s270_s2 = inlined_call_operand.vmem [shape: f32[1,128], index: 2, kind: input, shape index: {}]   ;;  %s271_s3 = inlined_call_operand.hbm [shape: bf16[16,128], index: 3, kind: output, shape index: {}]  }
   0x1   :  { %9 = vsyncpa [#allocation6], 0 }
   0x2   :  { %10 = vsyncpa [#allocation4], 0  ;;  %s15_s14 = sshll.u32 %s268_s0, 4  ;;  %s222_s15 = smov [#allocation2]   ;;  %s16_s14 = int_to_ptr.hbm [resolvable:$true] %s15_s14 }
   0x3   :  { %s17_s16 = sshll.u32 %s222_s15, 4  ;;  %s28_s19 = sshll.u32 %s269_s1, 4  ;;  %s18_s16 = int_to_ptr.vmem [resolvable:$true] %s17_s16  ;;  %s29_s19 = int_to_ptr.hbm [resolvable:$true] %s28_s19 }
   0x4   :  { %s223_s20 = smov 64   ;;  %s224_s21 = smov 4  }
   0x5   :  { %23 = dma.hbm_to_vmem [thread:$0]  %s16_s14, 128, %s18_s16, [#allocation3], %s223_s20, %s223_s20, %s224_s21  }
   0x6   :  { %s225_s22 = smov [#allocation5]  }
   0x7   :  { %s30_s23 = sshll.u32 %s225_s22, 4  ;;  %s31_s23 = int_to_ptr.vmem [resolvable:$true] %s30_s23 }
   0x8   :  { %36 = dma.hbm_to_vmem [thread:$0]  %s29_s19, 256, %s31_s23, [#allocation6], %s223_s20, %s223_s20, %s224_s21  }
   0x9   :  { %216 = dma.done.wait [#allocation3], 128  }
   0xa   :  { %217 = vsyncadd [#allocation3], 4294967168 }
   0xb   :  { %218 = dma.done.wait [#allocation6], 256  }
   0xc   :  { %219 = vsyncadd [#allocation6], 4294967040  ;;  %v132_v0 = vld [vmem:[#allocation5 + $0x8] sm:$0xff]  ;;  %v131_v1 = vld [vmem:[#allocation5] sm:$0xff]  ;;  %vm75_vm0 = vcmask 261120   ;;  %s226_s24 = smov [#allocation7]  }
   0xd   :  { %85 = vmatpush.bf16.msra.mxu0 %v132_v0  ;;  %v130_v2 = vld [vmem:[#allocation2] sm:$0xff]  ;;  %s101_s25 = sshll.u32 %s226_s24, 4  ;;  %s103_s28 = sshll.u32 %s271_s3, 4  ;;  %s102_s25 = int_to_ptr.vmem [resolvable:$true] %s101_s25  ;;  %s104_s28 = int_to_ptr.hbm [resolvable:$true] %s103_s28 }
   0xe   :  { %v143_v4 = vld [vmem:[%s270_s2] ss:$0 sm:$0xff] }
  0x11   :  { %86 = vmatpush.bf16.msra.mxu0 %v131_v1 }
  0x14   :  { %129 = vmatmul.msk.bf16.vlgmr.msra.gmra.mxu0 %vm75_vm0, %v130_v2 }
  0x91   :  { %v88_v3 = vpop.f32.mrf.mxu0 }
  0x92   :  { %v89_v6 = vadd.f32 %v143_v4, %v88_v3 }
  0x99   :  { %v90_v5 = vpop.f32.mrf.mxu0 }
  0x9a   :  { %v91_v7 = vadd.f32 %v143_v4, %v90_v5 }
  0x9c   :  { %v136_v8 = vpack.c.bf16 %v91_v7, %v89_v6 }
  0x9e   :  { %137 = vst [vmem:[#allocation7] sm:$0xff] %v136_v8  }
  0x9f   :  { %109 = dma.vmem_to_hbm [thread:$0]  %s102_s25, 128, %s104_s28, [#allocation4], %s223_s20, %s223_s20, %s224_s21  }
  0xa0   :  { %220 = dma.done.wait [#allocation4], 128  }
  0xa1   :  { %221 = vsyncadd [#allocation4], 4294967168 }
  0xa2   :  { %114 = vsyncpa [#allocation3], 1 }
  0xa3   :  { %115 = vsyncpa [#allocation6], 1 }
  0xa4   :  { %116 = vsyncpa [#allocation4], 1 }

</bundles_post_ra>
